<compile_context>
chip_gen: v7x
topology: tpu7x:2x2x1
jax: 0.10.0
libtpu: 0.0.40
codegen_flags: <defaults>
</compile_context>

<pallas_src>
import functools
from typing import NamedTuple

import jax
import jax.numpy as jnp
from jax.experimental import pallas as pl
from jax.experimental.pallas import tpu as pltpu


def _round_up(x, m):
    return ((x + m - 1) // m) * m


class PackedParams(NamedTuple):
    w_ab: jax.Array   # [L, 2*D_pad]  (Wa^T || Wb^T), mxu_dtype
    b_ab: jax.Array   # [1, 2*D_pad]  (ba || bb), f32
    wc:   jax.Array   # [1, D_pad] f32 (C==1)  or  [D_pad, C] mxu_dtype (C>1)
    bc:   jax.Array   # [1, C] f32


def pack_attn_params(wa, ba, wb, bb, wc, bc, *, mxu_dtype=jnp.float32):
    """One-time weight prepacking (hoist out of the per-call path).

    wa/wb: [D, L]; ba/bb: [D] or [1, D]; wc: [C, D]; bc: [C] or [1, C].
    D is zero-padded to a multiple of 128 so the two halves of the fused
    weight are lane-tile aligned; the zero columns contribute exactly 0 to A.
    """
    D, L = wa.shape
    C = wc.shape[0]
    D_pad = _round_up(D, 128)
    p = D_pad - D

    wa_t = jnp.pad(wa.T, ((0, 0), (0, p)))                    # [L, D_pad]
    wb_t = jnp.pad(wb.T, ((0, 0), (0, p)))                    # [L, D_pad]
    ba_r = jnp.pad(ba.reshape(1, D), ((0, 0), (0, p)))
    bb_r = jnp.pad(bb.reshape(1, D), ((0, 0), (0, p)))

    w_ab = jnp.concatenate([wa_t, wb_t], axis=1).astype(mxu_dtype)    # [L, 2*D_pad]
    b_ab = jnp.concatenate([ba_r, bb_r], axis=1).astype(jnp.float32)  # [1, 2*D_pad]

    if C == 1:
        wc_k = jnp.pad(wc.reshape(1, D), ((0, 0), (0, p))).astype(jnp.float32)  # [1, D_pad]
    else:
        wc_k = jnp.pad(wc.T, ((0, p), (0, 0))).astype(mxu_dtype)                # [D_pad, C]
    bc_k = bc.reshape(1, C).astype(jnp.float32)                                 # [1, C]
    return PackedParams(w_ab, b_ab, wc_k, bc_k)


def _gated_attn_kernel(x_ref, w_ab_ref, b_ab_ref, wc_ref, bc_ref, A_ref, *,
                       D_pad, reduce_c1):
    x = x_ref[...]
    if x.dtype != w_ab_ref.dtype:
        # In-kernel cast (VPU) of the already-resident tile: no extra HBM pass.
        x = x.astype(w_ab_ref.dtype)

    # Single fused MXU matmul: [tN, L] @ [L, 2*D_pad] -> f32 accumulation.
    h = jnp.dot(x, w_ab_ref[...],
                preferred_element_type=jnp.float32) + b_ab_ref[...]
    a = jnp.tanh(h[:, :D_pad])           # attention_a: Linear + Tanh    (EUP)
    b = jax.nn.sigmoid(h[:, D_pad:])     # attention_b: Linear + Sigmoid (EUP)
    ab = a * b                           # sigmoid gate                  (VPU)

    if reduce_c1:
        # n_classes == 1: broadcast-mul + lane reduction; keeps the MXU free.
        A = jnp.sum(ab * wc_ref[...], axis=-1, keepdims=True) + bc_ref[...]
    else:
        A = jnp.dot(ab.astype(wc_ref.dtype), wc_ref[...],
                    preferred_element_type=jnp.float32) + bc_ref[...]
    A_ref[...] = A.astype(A_ref.dtype)


def attn_net_gated_forward(x, params: PackedParams, *, tile_n=None):
    """Pallas forward pass. Returns (A, x) exactly like the PyTorch module.

    x: [N, L] (any float dtype; pass bf16 x + bf16-packed params to halve the
    dominant HBM stream).  params: output of pack_attn_params().
    """
    N, L = x.shape
    w_ab, b_ab, wc_k, bc_k = params
    two_D = w_ab.shape[1]
    D_pad = two_D // 2
    C = bc_k.shape[1]
    reduce_c1 = (C == 1)

    x_bytes = jnp.dtype(x.dtype).itemsize
    w_bytes = jnp.dtype(w_ab.dtype).itemsize
    wc_bytes = jnp.dtype(wc_k.dtype).itemsize

    def vmem_est(t):
        x_buf = 2 * t * L * x_bytes                              # 2x-buffered x stream
        wts = L * two_D * w_bytes + wc_k.size * wc_bytes + (two_D + C) * 4
        act = 2 * t * two_D * 4                                  # h + ab f32 temps
        out = 2 * t * C * 4                                      # 2x-buffered A tile
        return x_buf + wts + act + out

    # ---- tile_n selection --------------------------------------------------
    granule = 256   # MXU M-granule on v6e/v7x; multiple of 128 (v5e) and 16 (bf16)
    if tile_n is None:
        t = _round_up(2048, granule)
        budget = 28 << 20   # stay inside 32 MiB default scoped VMEM on every gen
        while t > granule and vmem_est(t) > budget:
            t -= granule
    else:
        t = _round_up(max(int(tile_n), 8), 8)
    if t >= N:
        t = N               # single full block (full array dims are always legal)
    tile_n = t

    grid = (pl.cdiv(N, tile_n),)   # partial boundary block handled by Pallas
    vmem_limit = int(min(max(vmem_est(tile_n) * 5 // 4, 16 << 20), 64 << 20))

    # ---- advisory cost estimate --------------------------------------------
    flops = 2 * N * L * two_D + N * two_D
    flops += 2 * N * D_pad if reduce_c1 else 2 * N * D_pad * C
    transcendentals = N * two_D
    bytes_accessed = int(N * L * x_bytes + w_ab.size * w_bytes
                         + wc_k.size * wc_bytes
                         + (b_ab.size + bc_k.size) * 4 + N * C * 4)

    kernel = functools.partial(_gated_attn_kernel, D_pad=D_pad,
                               reduce_c1=reduce_c1)
    A = pl.pallas_call(
        kernel,
        out_shape=jax.ShapeDtypeStruct((N, C), jnp.float32),
        grid_spec=pltpu.PrefetchScalarGridSpec(
            num_scalar_prefetch=0,
            grid=grid,
            in_specs=[
                pl.BlockSpec((tile_n, L), lambda i: (i, 0)),   # x (streamed)
                pl.BlockSpec(w_ab.shape, lambda i: (0, 0)),    # Wa||Wb (resident)
                pl.BlockSpec(b_ab.shape, lambda i: (0, 0)),    # ba||bb (resident)
                pl.BlockSpec(wc_k.shape, lambda i: (0, 0)),    # Wc     (resident)
                pl.BlockSpec(bc_k.shape, lambda i: (0, 0)),    # bc     (resident)
            ],
            out_specs=pl.BlockSpec((tile_n, C), lambda i: (i, 0)),
        ),
        compiler_params=pltpu.CompilerParams(
            dimension_semantics=("parallel",),
            vmem_limit_bytes=vmem_limit),
        cost_estimate=pl.CostEstimate(
            flops=flops,
            transcendentals=transcendentals,
            bytes_accessed=bytes_accessed),
    )(x, w_ab, b_ab, wc_k, bc_k)
    return A, x


def _init_params(key, L, D, n_classes):
    """Deterministic synthetic parameter init (PyTorch Linear shapes)."""
    ks = jax.random.split(key, 6)
    wa = jax.random.normal(ks[0], (D, L), jnp.float32) * 0.05
    ba = jax.random.normal(ks[1], (1, D), jnp.float32) * 0.05
    wb = jax.random.normal(ks[2], (D, L), jnp.float32) * 0.05
    bb = jax.random.normal(ks[3], (1, D), jnp.float32) * 0.05
    wc = jax.random.normal(ks[4], (n_classes, D), jnp.float32) * 0.05
    bc = jax.random.normal(ks[5], (1, n_classes), jnp.float32) * 0.05
    return wa, ba, wb, bb, wc, bc


if __name__ == "__main__":
    # Small shapes consistent with the module (defaults L=1024, D=256 scaled
    # down).  N=50 exercises partial boundary blocks without any padding.
    N, L, D, n_classes = 50, 256, 128, 1
    # TODO(synk): eval-mode only; train-mode Dropout(0.25) is not implemented.

    key = jax.random.PRNGKey(0)
    kx, kp = jax.random.split(key)
    x = jax.random.normal(kx, (N, L), jnp.float32)
    wa, ba, wb, bb, wc, bc = _init_params(kp, L, D, n_classes)

    # Plain-JAX reference.
    a_ref = jnp.tanh(x @ wa.T + ba)
    b_ref = jax.nn.sigmoid(x @ wb.T + bb)
    A_ref = (a_ref * b_ref) @ wc.T + bc

    # f32 path, auto tile (single full block at this size). Weights prepacked once.
    params_f32 = pack_attn_params(wa, ba, wb, bb, wc, bc)
    A, x_out = attn_net_gated_forward(x, params_f32)
    jax.block_until_ready((A, x_out))
    assert A.shape == (N, n_classes)
    assert jnp.allclose(A, A_ref, atol=1e-4, rtol=1e-4)
    assert jnp.array_equal(x_out, x)

    # f32 path, explicit small tile: multi-step pipelining + partial last block.
    A_t, _ = attn_net_gated_forward(x, params_f32, tile_n=16)
    jax.block_until_ready(A_t)
    assert jnp.allclose(A_t, A_ref, atol=1e-4, rtol=1e-4)

    # bf16 MXU path: x arrives in bf16 (no extra cast/pad pass inside the
    # forward), weights prepacked to bf16 once; f32 accumulation/activations.
    params_bf16 = pack_attn_params(wa, ba, wb, bb, wc, bc,
                                   mxu_dtype=jnp.bfloat16)
    A_bf16, _ = attn_net_gated_forward(x.astype(jnp.bfloat16), params_bf16,
                                       tile_n=16)
    jax.block_until_ready(A_bf16)
    assert jnp.allclose(A_bf16, A_ref, atol=5e-2, rtol=5e-2)

    # Multi-class head (C > 1): exercises the [D_pad, C] MXU projection path.
    C2 = 3
    wa2, ba2, wb2, bb2, wc2, bc2 = _init_params(jax.random.PRNGKey(1), L, D, C2)
    params_c = pack_attn_params(wa2, ba2, wb2, bb2, wc2, bc2)
    A_c, _ = attn_net_gated_forward(x, params_c, tile_n=16)
    jax.block_until_ready(A_c)
    a2 = jnp.tanh(x @ wa2.T + ba2)
    b2 = jax.nn.sigmoid(x @ wb2.T + bb2)
    A_c_ref = (a2 * b2) @ wc2.T + bc2
    assert A_c.shape == (N, C2)
    assert jnp.allclose(A_c, A_c_ref, atol=1e-4, rtol=1e-4)

    print("KERNEL_OK")
</pallas_src>

<mosaic_0001>
module attributes {stable_mosaic.version = 11 : i64} {
  func.func @_gated_attn_kernel(%arg0: i32, %arg1: memref<50x256xf32, #tpu.memory_space<vmem>>, %arg2: memref<256x256xf32, #tpu.memory_space<vmem>>, %arg3: memref<1x256xf32, #tpu.memory_space<vmem>>, %arg4: memref<1x128xf32, #tpu.memory_space<vmem>>, %arg5: memref<1x1xf32, #tpu.memory_space<vmem>>, %arg6: memref<50x1xf32, #tpu.memory_space<vmem>>) attributes {dimension_semantics = [#tpu.dimension_semantics<parallel>], iteration_bounds = array<i64: 1>, scalar_prefetch = 0 : i64, scratch_operands = 0 : i64, tpu.core_type = #tpu.core_type<tc>, window_params = [{transform_indices = @transform_0, window_bounds = array<i64: 50, 256>}, {pipeline_mode = #tpu.pipeline_mode<synchronous>, transform_indices = @transform_1, window_bounds = array<i64: 256, 256>}, {pipeline_mode = #tpu.pipeline_mode<synchronous>, transform_indices = @transform_2, window_bounds = array<i64: 1, 256>}, {pipeline_mode = #tpu.pipeline_mode<synchronous>, transform_indices = @transform_3, window_bounds = array<i64: 1, 128>}, {pipeline_mode = #tpu.pipeline_mode<synchronous>, transform_indices = @transform_4, window_bounds = array<i64: 1, 1>}, {transform_indices = @transform_5, window_bounds = array<i64: 50, 1>}]} {
    %c0 = arith.constant 0 : index
    %c0_0 = arith.constant 0 : index
    %0 = vector.load %arg1[%c0, %c0_0] : memref<50x256xf32, #tpu.memory_space<vmem>>, vector<50x256xf32>
    %c0_1 = arith.constant 0 : index
    %c0_2 = arith.constant 0 : index
    %1 = vector.load %arg2[%c0_1, %c0_2] : memref<256x256xf32, #tpu.memory_space<vmem>>, vector<256x256xf32>
    %cst = arith.constant dense<0.000000e+00> : vector<50x256xf32>
    %2 = tpu.matmul %0, %1, %cst {dimension_numbers = #tpu.dot_dimension_numbers<[1], [0], [0], [1], [0, 0, 1, 1], [], []>} : vector<50x256xf32>, vector<256x256xf32>, vector<50x256xf32> -> vector<50x256xf32>
    %c0_3 = arith.constant 0 : index
    %c0_4 = arith.constant 0 : index
    %3 = vector.load %arg3[%c0_3, %c0_4] : memref<1x256xf32, #tpu.memory_space<vmem>>, vector<1x256xf32>
    %4 = vector.broadcast %3 : vector<1x256xf32> to vector<50x256xf32>
    %5 = arith.addf %2, %4 : vector<50x256xf32>
    %6 = vector.extract_strided_slice %5 {offsets = [0, 0], sizes = [50, 128], strides = [1, 1]} : vector<50x256xf32> to vector<50x128xf32>
    %7 = math.tanh %6 : vector<50x128xf32>
    %8 = vector.extract_strided_slice %5 {offsets = [0, 128], sizes = [50, 128], strides = [1, 1]} : vector<50x256xf32> to vector<50x128xf32>
    %9 = arith.negf %8 : vector<50x128xf32>
    %10 = math.exp %9 : vector<50x128xf32>
    %cst_5 = arith.constant 1.000000e+00 : f32
    %11 = vector.broadcast %cst_5 : f32 to vector<50x128xf32>
    %12 = arith.addf %11, %10 : vector<50x128xf32>
    %13 = arith.divf %11, %12 : vector<50x128xf32>
    %14 = arith.mulf %7, %13 : vector<50x128xf32>
    %c0_6 = arith.constant 0 : index
    %c0_7 = arith.constant 0 : index
    %15 = vector.load %arg4[%c0_6, %c0_7] : memref<1x128xf32, #tpu.memory_space<vmem>>, vector<1x128xf32>
    %16 = vector.broadcast %15 : vector<1x128xf32> to vector<50x128xf32>
    %17 = arith.mulf %14, %16 : vector<50x128xf32>
    %cst_8 = arith.constant dense<0.000000e+00> : vector<50xf32>
    %18 = vector.multi_reduction <add>, %17, %cst_8 [1] : vector<50x128xf32> to vector<50xf32>
    %19 = vector.shape_cast %18 : vector<50xf32> to vector<50x1xf32>
    %c0_9 = arith.constant 0 : index
    %c0_10 = arith.constant 0 : index
    %20 = vector.load %arg5[%c0_9, %c0_10] : memref<1x1xf32, #tpu.memory_space<vmem>>, vector<1x1xf32>
    %21 = vector.broadcast %20 : vector<1x1xf32> to vector<50x1xf32>
    %22 = arith.addf %19, %21 : vector<50x1xf32>
    %c0_11 = arith.constant 0 : index
    %c0_12 = arith.constant 0 : index
    %23 = vector.load %arg6[%c0_11, %c0_12] : memref<50x1xf32, #tpu.memory_space<vmem>>, vector<50x1xf32>
    tpu.vector_store %arg6[%c0_11, %c0_12], %22 {strides = array<i32>} : memref<50x1xf32, #tpu.memory_space<vmem>>, vector<50x1xf32>,
    return
  }
  func.func @transform_0(%arg0: i32) -> (i32, i32) {
    %c0_i32 = arith.constant 0 : i32
    %c0_i32_0 = arith.constant 0 : i32
    return %arg0, %c0_i32 : i32, i32
  }
  func.func @transform_1(%arg0: i32) -> (i32, i32) {
    %c0_i32 = arith.constant 0 : i32
    %c0_i32_0 = arith.constant 0 : i32
    %c0_i32_1 = arith.constant 0 : i32
    return %c0_i32, %c0_i32_0 : i32, i32
  }
  func.func @transform_2(%arg0: i32) -> (i32, i32) {
    %c0_i32 = arith.constant 0 : i32
    %c0_i32_0 = arith.constant 0 : i32
    %c0_i32_1 = arith.constant 0 : i32
    return %c0_i32, %c0_i32_0 : i32, i32
  }
  func.func @transform_3(%arg0: i32) -> (i32, i32) {
    %c0_i32 = arith.constant 0 : i32
    %c0_i32_0 = arith.constant 0 : i32
    %c0_i32_1 = arith.constant 0 : i32
    return %c0_i32, %c0_i32_0 : i32, i32
  }
  func.func @transform_4(%arg0: i32) -> (i32, i32) {
    %c0_i32 = arith.constant 0 : i32
    %c0_i32_0 = arith.constant 0 : i32
    %c0_i32_1 = arith.constant 0 : i32
    return %c0_i32, %c0_i32_0 : i32, i32
  }
  func.func @transform_5(%arg0: i32) -> (i32, i32) {
    %c0_i32 = arith.constant 0 : i32
    %c0_i32_0 = arith.constant 0 : i32
    return %arg0, %c0_i32 : i32, i32
  }
}

</mosaic_0001>

<bundles_post_ra>
// kernel: tpu_custom_call.1
= control target key start
LH: loop header
LB: loop body
LE: loop exit
PB: predicated region body
PF: predicated region fallthrough
CT: control target
= control target key end

     0   :  { %s655_s0 = inlined_call_operand.hbm [shape: f32[50,256], index: 0, kind: input, shape index: {}]   ;;  %s656_s1 = inlined_call_operand.hbm [shape: f32[256,256], index: 1, kind: input, shape index: {}]   ;;  %s657_s2 = inlined_call_operand.vmem [shape: f32[1,256], index: 2, kind: input, shape index: {}]   ;;  %s658_s3 = inlined_call_operand.vmem [shape: f32[1,128], index: 3, kind: input, shape index: {}]   ;;  %s659_s4 = inlined_call_operand.<no memory space> [shape: f32[1,1], index: 4, kind: input, shape index: {}]   ;;  %s660_s5 = inlined_call_operand.vmem [shape: f32[50,1], index: 5, kind: output, shape index: {}]  }
   0x1   :  { %v10_v0 = vstv %s659_s4 }
   0x2   :  { %11 = vst [vmem:[#allocation2] sm:$0x1] %v10_v0 }
   0x3   :  { %12 = vsyncpa [#allocation4], 0 }
   0x4   :  { %13 = vsyncpa [#allocation6], 0  ;;  %s561_s20 = smov [#allocation3]   ;;  %s513_s24 = scalar_lea.hbm %s655_s0, 1792 }
   0x5   :  { %s19_s21 = sshll.u32 %s561_s20, 4  ;;  %p514_p0 = scmp.ne.s32.totalorder %s655_s0, %s513_s24  ;;  %s20_s21 = int_to_ptr.vmem [resolvable:$true] %s19_s21 }
   0x6   :  { %p517_p1 = scmp.lt.u32.totalorder %s513_s24, %s655_s0 }
   0x8   :  { %p519_p2 = pnand %p517_p1, %p514_p0 }
   0xa   :  { %522 = shalt.err (!%p519_p2)
}
   0xb   :  { %s523_s4 = scalar_lea.vmem %s20_s21, 1792  ;;  %p528_p4 = scmp.lt.s32.totalorder %s20_s21, %s20_s21 }
   0xc   :  { %p524_p3 = scmp.ne.s32.totalorder %s20_s21, %s523_s4  ;;  %p529_p5 = scmp.lt.s32.totalorder %s523_s4, %s523_s4 }
   0xe   :  { %p530_p6 = por %p529_p5, %p528_p4 }
  0x10   :  { %p531_p7 = pnand %p530_p6, %p524_p3 }
  0x12   :  { %534 = shalt.err (!%p531_p7)
}
  0x13   :  { %s562_s29 = smov 256   ;;  %s563_s30 = smov 16  }
  0x14   :  { %25 = dma.hbm_to_vmem [thread:$0]  %s655_s0, 1792, %s20_s21, [#allocation4], %s562_s29, %s562_s29, %s563_s30  }
  0x15   :  { %s564_s8 = smov [#allocation5]   ;;  %s535_s12 = scalar_lea.hbm %s656_s1, 8192 }
  0x16   :  { %s31_s9 = sshll.u32 %s564_s8, 4  ;;  %p536_p8 = scmp.ne.s32.totalorder %s656_s1, %s535_s12  ;;  %s32_s9 = int_to_ptr.vmem [resolvable:$true] %s31_s9 }
  0x17   :  { %p539_p9 = scmp.lt.u32.totalorder %s535_s12, %s656_s1 }
  0x19   :  { %p541_p10 = pnand %p539_p9, %p536_p8 }
  0x1b   :  { %544 = shalt.err (!%p541_p10)
}
  0x1c   :  { %s545_s17 = scalar_lea.vmem %s32_s9, 8192  ;;  %p550_p12 = scmp.lt.s32.totalorder %s32_s9, %s32_s9 }
  0x1d   :  { %p546_p11 = scmp.ne.s32.totalorder %s32_s9, %s545_s17  ;;  %p551_p13 = scmp.lt.s32.totalorder %s545_s17, %s545_s17 }
  0x1f   :  { %p552_p0 = por %p551_p13, %p550_p12 }
  0x21   :  { %p553_p1 = pnand %p552_p0, %p546_p11 }
  0x23   :  { %556 = shalt.err (!%p553_p1)
}
  0x24   :  { %37 = dma.hbm_to_vmem [thread:$0]  %s656_s1, 8192, %s32_s9, [#allocation6], %s562_s29, %s562_s29, %s563_s30  }
  0x25   :  { %557 = dma.done.wait [#allocation4], 1792  }
  0x26   :  { %558 = vsyncadd [#allocation4], 4294965504 }
  0x27   :  { %559 = dma.done.wait [#allocation6], 8192  }
  0x28   :  { %560 = vsyncadd [#allocation6], 4294959104  ;;  %v65_v1 = vld [vmem:[#allocation5 + $0x8] sm:$0xff]  ;;  %v67_v2 = vld [vmem:[#allocation5 + $0x18] sm:$0xff]  ;;  %vm329_vm0 = vcmask 1041408   ;;  %vm347_vm1 = vcmask 7168  }
  0x29   :  { %v64_v3 = vld [vmem:[#allocation5] sm:$0xff]  ;;  %v371_v4 = vpack.c.bf16 %v67_v2, %v65_v1  ;;  %v66_v5 = vld [vmem:[#allocation5 + $0x10] sm:$0xff]  ;;  %v69_v6 = vld [vmem:[#allocation5 + $0x28] sm:$0xff]  ;;  %vm354_vm2 = vcmask 1024  }
  0x2a   :  { %v71_v7 = vld [vmem:[#allocation5 + $0x38] sm:$0xff]  ;;  %v373_v8 = vpack.c.bf16 %v66_v5, %v64_v3  ;;  %v68_v10 = vld [vmem:[#allocation5 + $0x20] sm:$0xff]  ;;  %v70_v11 = vld [vmem:[#allocation5 + $0x30] sm:$0xff] }
  0x2b   :  { %v375_v9 = vpack.c.bf16 %v71_v7, %v69_v6  ;;  %v73_v12 = vld [vmem:[#allocation5 + $0x48] sm:$0xff]  ;;  %372 = vmatprep.subr.bf16.mxu0 %v371_v4  ;;  %435 = vmatprep.subr.bf16.mxu1 %v371_v4  ;;  %v75_v13 = vld [vmem:[#allocation5 + $0x58] sm:$0xff]  ;;  %v377_v14 = vpack.c.bf16 %v70_v11, %v68_v10  ;;  %v72_v16 = vld [vmem:[#allocation5 + $0x40] sm:$0xff] }
  0x2c   :  { %374 = vmatpush1.bf16.msra.mxu0 %v373_v8  ;;  %451 = vmatpush1.bf16.msra.mxu1 %v373_v8  ;;  %v379_v15 = vpack.c.bf16 %v75_v13, %v73_v12  ;;  %v74_v17 = vld [vmem:[#allocation5 + $0x50] sm:$0xff]  ;;  %v77_v18 = vld [vmem:[#allocation5 + $0x68] sm:$0xff]  ;;  %v79_v19 = vld [vmem:[#allocation5 + $0x78] sm:$0xff] }
  0x2d   :  { %376 = vmatprep.subr.bf16.mxu0 %v375_v9  ;;  %436 = vmatprep.subr.bf16.mxu1 %v375_v9  ;;  %v381_v20 = vpack.c.bf16 %v74_v17, %v72_v16  ;;  %v383_v21 = vpack.c.bf16 %v79_v19, %v77_v18  ;;  %v76_v22 = vld [vmem:[#allocation5 + $0x60] sm:$0xff]  ;;  %v78_v23 = vld [vmem:[#allocation5 + $0x70] sm:$0xff]  ;;  %v81_v24 = vld [vmem:[#allocation5 + $0x88] sm:$0xff] }
  0x2e   :  { %v83_v25 = vld [vmem:[#allocation5 + $0x98] sm:$0xff]  ;;  %v385_v26 = vpack.c.bf16 %v78_v23, %v76_v22  ;;  %v80_v28 = vld [vmem:[#allocation5 + $0x80] sm:$0xff]  ;;  %v82_v29 = vld [vmem:[#allocation5 + $0x90] sm:$0xff] }
  0x2f   :  { %v387_v27 = vpack.c.bf16 %v83_v25, %v81_v24  ;;  %v85_v30 = vld [vmem:[#allocation5 + $0xa8] sm:$0xff]  ;;  %v87_v31 = vld [vmem:[#allocation5 + $0xb8] sm:$0xff]  ;;  %v389_v32 = vpack.c.bf16 %v82_v29, %v80_v28  ;;  %v84_v34 = vld [vmem:[#allocation5 + $0xa0] sm:$0xff] }
  0x30   :  { %378 = vmatpush1.bf16.msra.mxu0 %v377_v14  ;;  %452 = vmatpush1.bf16.msra.mxu1 %v377_v14  ;;  %v391_v33 = vpack.c.bf16 %v87_v31, %v85_v30  ;;  %v86_v35 = vld [vmem:[#allocation5 + $0xb0] sm:$0xff]  ;;  %v89_v36 = vld [vmem:[#allocation5 + $0xc8] sm:$0xff]  ;;  %v91_v37 = vld [vmem:[#allocation5 + $0xd8] sm:$0xff] }
  0x31   :  { %380 = vmatprep.subr.bf16.mxu0 %v379_v15  ;;  %437 = vmatprep.subr.bf16.mxu1 %v379_v15  ;;  %v393_v38 = vpack.c.bf16 %v86_v35, %v84_v34  ;;  %v88_v39 = vld [vmem:[#allocation5 + $0xc0] sm:$0xff]  ;;  %v395_v40 = vpack.c.bf16 %v91_v37, %v89_v36  ;;  %v90_v41 = vld [vmem:[#allocation5 + $0xd0] sm:$0xff]  ;;  %v51_v42 = vld [vmem:[#allocation3 + $0x8] sm:$0xff] }
  0x32   :  { %v59_v43 = vld [vmem:[#allocation3 + $0x48] sm:$0xff]  ;;  %v93_v44 = vld [vmem:[#allocation5 + $0xe8] sm:$0xff]  ;;  %204 = vmatprep.mubr.f32.mxu0 %v51_v42  ;;  %v397_v46 = vpack.c.bf16 %v90_v41, %v88_v39  ;;  %v92_v48 = vld [vmem:[#allocation5 + $0xe0] sm:$0xff] }
  0x33   :  { %v95_v45 = vld [vmem:[#allocation5 + $0xf8] sm:$0xff]  ;;  %228 = vmatprep.mubr.f32.mxu1 %v59_v43  ;;  %v94_v49 = vld [vmem:[#allocation5 + $0xf0] sm:$0xff]  ;;  %v97_v50 = vld [vmem:[#allocation5 + $0x108] sm:$0xff] }
  0x34   :  { %382 = vmatpush1.bf16.msra.mxu0 %v381_v20  ;;  %453 = vmatpush1.bf16.msra.mxu1 %v381_v20  ;;  %v399_v47 = vpack.c.bf16 %v95_v45, %v93_v44  ;;  %v99_v51 = vld [vmem:[#allocation5 + $0x118] sm:$0xff]  ;;  %v401_v52 = vpack.c.bf16 %v94_v49, %v92_v48  ;;  %v96_v54 = vld [vmem:[#allocation5 + $0x100] sm:$0xff]  ;;  %v98_v55 = vld [vmem:[#allocation5 + $0x110] sm:$0xff] }
  0x35   :  { %384 = vmatprep.subr.bf16.mxu0 %v383_v21  ;;  %438 = vmatprep.subr.bf16.mxu1 %v383_v21  ;;  %v403_v53 = vpack.c.bf16 %v99_v51, %v97_v50  ;;  %v101_v56 = vld [vmem:[#allocation5 + $0x128] sm:$0xff]  ;;  %v103_v57 = vld [vmem:[#allocation5 + $0x138] sm:$0xff]  ;;  %v405_v58 = vpack.c.bf16 %v98_v55, %v96_v54  ;;  %v100_v60 = vld [vmem:[#allocation5 + $0x120] sm:$0xff] }
  0x36   :  { %v407_v59 = vpack.c.bf16 %v103_v57, %v101_v56  ;;  %v102_v61 = vld [vmem:[#allocation5 + $0x130] sm:$0xff]  ;;  %v105_v62 = vld [vmem:[#allocation5 + $0x148] sm:$0xff]  ;;  %v107_v63 = vld [vmem:[#allocation5 + $0x158] sm:$0xff] }
  0x37   :  { %v409_v0 = vpack.c.bf16 %v102_v61, %v100_v60  ;;  %v411_v1 = vpack.c.bf16 %v107_v63, %v105_v62  ;;  %v104_v2 = vld [vmem:[#allocation5 + $0x140] sm:$0xff]  ;;  %v106_v3 = vld [vmem:[#allocation5 + $0x150] sm:$0xff]  ;;  %v109_v4 = vld [vmem:[#allocation5 + $0x168] sm:$0xff] }
  0x38   :  { %386 = vmatpush1.bf16.msra.mxu0 %v385_v26  ;;  %454 = vmatpush1.bf16.msra.mxu1 %v385_v26  ;;  %v111_v5 = vld [vmem:[#allocation5 + $0x178] sm:$0xff]  ;;  %v413_v6 = vpack.c.bf16 %v106_v3, %v104_v2  ;;  %v108_v8 = vld [vmem:[#allocation5 + $0x160] sm:$0xff]  ;;  %v110_v9 = vld [vmem:[#allocation5 + $0x170] sm:$0xff] }
  0x39   :  { %388 = vmatprep.subr.bf16.mxu0 %v387_v27  ;;  %439 = vmatprep.subr.bf16.mxu1 %v387_v27  ;;  %v415_v7 = vpack.c.bf16 %v111_v5, %v109_v4  ;;  %v113_v10 = vld [vmem:[#allocation5 + $0x188] sm:$0xff]  ;;  %v115_v11 = vld [vmem:[#allocation5 + $0x198] sm:$0xff]  ;;  %v417_v12 = vpack.c.bf16 %v110_v9, %v108_v8  ;;  %v112_v14 = vld [vmem:[#allocation5 + $0x180] sm:$0xff] }
  0x3a   :  { %v419_v13 = vpack.c.bf16 %v115_v11, %v113_v10  ;;  %v114_v15 = vld [vmem:[#allocation5 + $0x190] sm:$0xff]  ;;  %v117_v16 = vld [vmem:[#allocation5 + $0x1a8] sm:$0xff]  ;;  %v119_v17 = vld [vmem:[#allocation5 + $0x1b8] sm:$0xff] }
  0x3b   :  { %v421_v18 = vpack.c.bf16 %v114_v15, %v112_v14  ;;  %v423_v19 = vpack.c.bf16 %v119_v17, %v117_v16  ;;  %v116_v20 = vld [vmem:[#allocation5 + $0x1a0] sm:$0xff]  ;;  %v118_v21 = vld [vmem:[#allocation5 + $0x1b0] sm:$0xff]  ;;  %v121_v22 = vld [vmem:[#allocation5 + $0x1c8] sm:$0xff] }
  0x3c   :  { %390 = vmatpush1.bf16.msra.mxu0 %v389_v32  ;;  %455 = vmatpush1.bf16.msra.mxu1 %v389_v32  ;;  %v123_v23 = vld [vmem:[#allocation5 + $0x1d8] sm:$0xff]  ;;  %v425_v24 = vpack.c.bf16 %v118_v21, %v116_v20  ;;  %v120_v26 = vld [vmem:[#allocation5 + $0x1c0] sm:$0xff]  ;;  %v122_v27 = vld [vmem:[#allocation5 + $0x1d0] sm:$0xff] }
  0x3d   :  { %392 = vmatprep.subr.bf16.mxu0 %v391_v33  ;;  %440 = vmatprep.subr.bf16.mxu1 %v391_v33  ;;  %v427_v25 = vpack.c.bf16 %v123_v23, %v121_v22  ;;  %v125_v28 = vld [vmem:[#allocation5 + $0x1e8] sm:$0xff]  ;;  %v127_v29 = vld [vmem:[#allocation5 + $0x1f8] sm:$0xff]  ;;  %v429_v30 = vpack.c.bf16 %v122_v27, %v120_v26  ;;  %v124_v32 = vld [vmem:[#allocation5 + $0x1e0] sm:$0xff] }
  0x3e   :  { %v431_v31 = vpack.c.bf16 %v127_v29, %v125_v28  ;;  %v126_v33 = vld [vmem:[#allocation5 + $0x1f0] sm:$0xff]  ;;  %v53_v37 = vld [vmem:[#allocation3 + $0x18] sm:$0xff]  ;;  %v52_v39 = vld [vmem:[#allocation3 + $0x10] sm:$0xff] }
  0x3f   :  { %v433_v34 = vpack.c.bf16 %v126_v33, %v124_v32  ;;  %v50_v35 = vld [vmem:[#allocation3] sm:$0xff]  ;;  %v55_v41 = vld [vmem:[#allocation3 + $0x28] sm:$0xff]  ;;  %v57_v45 = vld [vmem:[#allocation3 + $0x38] sm:$0xff] }
  0x40   :  { %394 = vmatpush1.bf16.msra.mxu0 %v393_v38  ;;  %456 = vmatpush1.bf16.msra.mxu1 %v393_v38  ;;  %v58_v36 = vld [vmem:[#allocation3 + $0x40] sm:$0xff]  ;;  %v61_v38 = vld [vmem:[#allocation3 + $0x58] sm:$0xff]  ;;  %v63_v42 = vld [vmem:[#allocation3 + $0x68] sm:$0x3] }
  0x41   :  { %396 = vmatprep.subr.bf16.mxu0 %v395_v40  ;;  %441 = vmatprep.subr.bf16.mxu1 %v395_v40  ;;  %v60_v40 = vld [vmem:[#allocation3 + $0x50] sm:$0xff]  ;;  %v54_v43 = vld [vmem:[#allocation3 + $0x20] sm:$0xff] }
  0x42   :  { %v62_v44 = vld [vmem:[#allocation3 + $0x60] sm:$0x3] }
  0x43   :  { %v128_v50 = vld [vmem:[%s657_s2] sm:$0x3] }
  0x44   :  { %398 = vmatpush1.bf16.msra.mxu0 %v397_v46  ;;  %457 = vmatpush1.bf16.msra.mxu1 %v397_v46  ;;  %v56_v46 = vld [vmem:[#allocation3 + $0x30] sm:$0xff] }
  0x45   :  { %400 = vmatprep.subr.bf16.mxu0 %v399_v47  ;;  %442 = vmatprep.subr.bf16.mxu1 %v399_v47  ;;  %v130_v47 = vlaneseq }
  0x47   :  { %v131_v48 = vshrl.u32 %v130_v47, 7 }
  0x48   :  { %402 = vmatpush1.bf16.msra.mxu0 %v401_v52  ;;  %458 = vmatpush1.bf16.msra.mxu1 %v401_v52 }
  0x49   :  { %404 = vmatprep.subr.bf16.mxu0 %v403_v53  ;;  %443 = vmatprep.subr.bf16.mxu1 %v403_v53  ;;  %v136_v49 = vsub.s32 1, %v131_v48 }
  0x4b   :  { %v137_v51 = vrot.slane %v128_v50, %v136_v49 }
  0x4c   :  { %406 = vmatpush1.bf16.msra.mxu0 %v405_v58  ;;  %459 = vmatpush1.bf16.msra.mxu1 %v405_v58  ;;  %v132_v58 = vsub.s32 0, %v131_v48 }
  0x4d   :  { %408 = vmatprep.subr.bf16.mxu0 %v407_v59  ;;  %444 = vmatprep.subr.bf16.mxu1 %v407_v59 }
  0x4e   :  { %v133_v3 = vrot.slane %v128_v50, %v132_v58 }
  0x50   :  { %410 = vmatpush1.bf16.msra.mxu0 %v409_v0  ;;  %460 = vmatpush1.bf16.msra.mxu1 %v409_v0 }
  0x51   :  { %412 = vmatprep.subr.bf16.mxu0 %v411_v1  ;;  %445 = vmatprep.subr.bf16.mxu1 %v411_v1 }
  0x54   :  { %414 = vmatpush1.bf16.msra.mxu0 %v413_v6  ;;  %461 = vmatpush1.bf16.msra.mxu1 %v413_v6 }
  0x55   :  { %416 = vmatprep.subr.bf16.mxu0 %v415_v7  ;;  %446 = vmatprep.subr.bf16.mxu1 %v415_v7 }
  0x58   :  { %418 = vmatpush1.bf16.msra.mxu0 %v417_v12  ;;  %462 = vmatpush1.bf16.msra.mxu1 %v417_v12 }
  0x59   :  { %420 = vmatprep.subr.bf16.mxu0 %v419_v13  ;;  %447 = vmatprep.subr.bf16.mxu1 %v419_v13 }
  0x5c   :  { %422 = vmatpush1.bf16.msra.mxu0 %v421_v18  ;;  %463 = vmatpush1.bf16.msra.mxu1 %v421_v18 }
  0x5d   :  { %424 = vmatprep.subr.bf16.mxu0 %v423_v19  ;;  %448 = vmatprep.subr.bf16.mxu1 %v423_v19 }
  0x60   :  { %426 = vmatpush1.bf16.msra.mxu0 %v425_v24  ;;  %464 = vmatpush1.bf16.msra.mxu1 %v425_v24 }
  0x61   :  { %428 = vmatprep.subr.bf16.mxu0 %v427_v25  ;;  %449 = vmatprep.subr.bf16.mxu1 %v427_v25 }
  0x64   :  { %430 = vmatpush1.bf16.msra.mxu0 %v429_v30  ;;  %465 = vmatpush1.bf16.msra.mxu1 %v429_v30 }
  0x65   :  { %432 = vmatprep.subr.bf16.mxu0 %v431_v31  ;;  %450 = vmatprep.subr.bf16.mxu1 %v431_v31 }
  0x68   :  { %434 = vmatpush1.bf16.msra.mxu0 %v433_v34  ;;  %466 = vmatpush1.bf16.msra.mxu1 %v433_v34 }
  0x6b   :  { %205 = vmatmul.mubr.f32.vlgmr.msra.gmra.mrb[0].mxu0 %v50_v35  ;;  %229 = vmatmul.mubr.f32.vlgmr.msra.gmra.mrb[0].mxu1 %v58_v36 }
  0x6c   :  { %210 = vmatprep.mubr.f32.mxu0 %v53_v37  ;;  %234 = vmatprep.mubr.f32.mxu1 %v61_v38 }
  0x6f   :  { %211 = vmatmul.mubr.f32.gmra.mrb[2].mxu0 %v52_v39  ;;  %235 = vmatmul.mubr.f32.gmra.mrb[2].mxu1 %v60_v40 }
  0x70   :  { %216 = vmatprep.mubr.f32.mxu0 %v55_v41  ;;  %240 = vmatprep.mubr.f32.mxu1 %v63_v42  ;;  %v369_v42 = vld [vmem:[%s658_s3] ss:$0 sm:$0xff] }
  0x73   :  { %217 = vmatmul.mubr.f32.gmra.mrb[4].mxu0 %v54_v43  ;;  %241 = vmatmul.mubr.f32.gmra.mrb[4].mxu1 %v62_v44 }
  0x74   :  { %222 = vmatprep.mubr.f32.mxu0 %v57_v45 }
  0x77   :  { %223 = vmatmul.mubr.f32.gmra.mrb[6].mxu0 %v56_v46 }
 0x13e   :  { %v206_v52 = vpop.f32.mrb[0].mxu0  ;;  %v230_v53 = vpop.f32.mrb[0].mxu1 }
 0x13f   :  { %v208_v54 = vpop.f32.mrb[1].mxu0  ;;  %v232_v55 = vpop.f32.mrb[1].mxu1  ;;  %v207_v12 = vadd.f32 %v206_v52, %v133_v3  ;;  %v231_v16 = vadd.f32 %v230_v53, %v133_v3 }
 0x140   :  { %v209_v56 = vadd.f32 %v208_v54, %v137_v51  ;;  %v233_v57 = vadd.f32 %v232_v55, %v137_v51 }
 0x142   :  { %v362_v59 = vmul.f32 -1.442695, %v209_v56  ;;  %v366_v60 = vmul.f32 -1.442695, %v233_v57  ;;  %v212_v61 = vpop.f32.mrb[2].mxu0  ;;  %v236_v62 = vpop.f32.mrb[2].mxu1 }
 0x143   :  { %v214_v63 = vpop.f32.mrb[3].mxu0  ;;  %v238_v0 = vpop.f32.mrb[3].mxu1  ;;  %v213_v23 = vadd.f32 %v212_v61, %v133_v3  ;;  %v237_v25 = vadd.f32 %v236_v62, %v133_v3 }
 0x144   :  { %471 = vpow2.f32 %v362_v59  ;;  %v215_v1 = vadd.f32 %v214_v63, %v137_v51  ;;  %v239_v2 = vadd.f32 %v238_v0, %v137_v51 }
 0x145   :  { %473 = vpow2.f32 %v366_v60 }
 0x146   :  { %v363_v4 = vmul.f32 -1.442695, %v215_v1  ;;  %v367_v5 = vmul.f32 -1.442695, %v239_v2  ;;  %v218_v6 = vpop.f32.mrb[4].mxu0  ;;  %v242_v7 = vpop.f32.mrb[4].mxu1 }
 0x147   :  { %v220_v8 = vpop.f32.mrb[5].mxu0  ;;  %v244_v9 = vpop.f32.mrb[5].mxu1  ;;  %v219_v29 = vadd.f32 %v218_v6, %v133_v3  ;;  %v243_v31 = vadd.f32 %v242_v7, %v133_v3 }
 0x148   :  { %475 = vpow2.f32 %v363_v4  ;;  %v221_v10 = vadd.f32 %v220_v8, %v137_v51  ;;  %v245_v11 = vadd.f32 %v244_v9, %v137_v51 }
 0x149   :  { %477 = vpow2.f32 %v367_v5  ;;  %v370_v5 = vld [vmem:[#allocation2] ss:$0 sm:$0xff] }
 0x14a   :  { %v364_v13 = vmul.f32 -1.442695, %v221_v10  ;;  %v368_v14 = vmul.f32 -1.442695, %v245_v11  ;;  %v224_v15 = vpop.f32.mrb[6].mxu0 }
 0x14b   :  { %v226_v17 = vpop.f32.mrb[7].mxu0  ;;  %v225_v37 = vadd.f32 %v224_v15, %v133_v3 }
 0x14c   :  { %479 = vpow2.f32 %v364_v13  ;;  %v227_v18 = vadd.f32 %v226_v17, %v137_v51 }
 0x14d   :  { %481 = vpow2.f32 %v368_v14 }
 0x14e   :  { %v472_v19 = vpop.eup %471  ;;  %483 = vtanh.f32 %v207_v12  ;;  %v365_v20 = vmul.f32 -1.442695, %v227_v18 }
 0x14f   :  { %v474_v21 = vpop.eup %473  ;;  %485 = vtanh.f32 %v231_v16  ;;  %v275_v22 = vadd.f32 1.0, %v472_v19 }
 0x150   :  { %v279_v24 = vadd.f32 1.0, %v474_v21  ;;  %487 = vpow2.f32 %v365_v20 }
 0x151   :  { %489 = vrcp.f32 %v275_v22 }
 0x152   :  { %v476_v26 = vpop.eup %475  ;;  %491 = vrcp.f32 %v279_v24 }
 0x153   :  { %v478_v27 = vpop.eup %477  ;;  %493 = vtanh.f32 %v213_v23  ;;  %v276_v28 = vadd.f32 1.0, %v476_v26 }
 0x154   :  { %495 = vtanh.f32 %v237_v25  ;;  %v280_v30 = vadd.f32 1.0, %v478_v27 }
 0x155   :  { %497 = vrcp.f32 %v276_v28 }
 0x156   :  { %v480_v32 = vpop.eup %479  ;;  %499 = vrcp.f32 %v280_v30 }
 0x157   :  { %v482_v33 = vpop.eup %481  ;;  %501 = vtanh.f32 %v219_v29  ;;  %v277_v34 = vadd.f32 1.0, %v480_v32 }
 0x158   :  { %v484_v35 = vpop.eup %483  ;;  %503 = vtanh.f32 %v243_v31  ;;  %v281_v36 = vadd.f32 1.0, %v482_v33 }
 0x159   :  { %v486_v38 = vpop.eup %485  ;;  %505 = vrcp.f32 %v277_v34 }
 0x15a   :  { %v488_v39 = vpop.eup %487  ;;  %507 = vrcp.f32 %v281_v36 }
 0x15b   :  { %v490_v40 = vpop.eup %489  ;;  %v278_v41 = vadd.f32 1.0, %v488_v39  ;;  %509 = vtanh.f32 %v225_v37 }
 0x15c   :  { %v492_v43 = vpop.eup %491  ;;  %v296_v44 = vmul.f32 %v490_v40, %v484_v35 }
 0x15d   :  { %v494_v45 = vpop.eup %493  ;;  %511 = vrcp.f32 %v278_v41  ;;  %v300_v46 = vmul.f32 %v492_v43, %v486_v38 }
 0x15e   :  { %v496_v47 = vpop.eup %495  ;;  %v310_v48 = vmul.f32 %v369_v42, %v296_v44 }
 0x15f   :  { %v498_v49 = vpop.eup %497  ;;  %v314_v55 = vmul.f32 %v369_v42, %v300_v46 }
 0x160   :  { %v500_v50 = vpop.eup %499  ;;  %317 = vadd.xlane.f32.xlu0 %v310_v48  ;;  %v297_v51 = vmul.f32 %v498_v49, %v494_v45 }
 0x161   :  { %v502_v52 = vpop.eup %501  ;;  %v301_v53 = vmul.f32 %v500_v50, %v496_v47 }
 0x162   :  { %v504_v54 = vpop.eup %503  ;;  %v311_v62 = vmul.f32 %v369_v42, %v297_v51 }
 0x163   :  { %v506_v56 = vpop.eup %505  ;;  %v315_v4 = vmul.f32 %v369_v42, %v301_v53 }
 0x164   :  { %v508_v57 = vpop.eup %507  ;;  %325 = vadd.xlane.f32.xlu0 %v314_v55  ;;  %v298_v58 = vmul.f32 %v506_v56, %v502_v52 }
 0x165   :  { %v302_v59 = vmul.f32 %v508_v57, %v504_v54  ;;  %v510_v60 = vpop.eup %509 }
 0x166   :  { %v312_v61 = vmul.f32 %v369_v42, %v298_v58 }
 0x167   :  { %v512_v63 = vpop.eup %511  ;;  %v316_v0 = vmul.f32 %v369_v42, %v302_v59 }
 0x168   :  { %321 = vadd.xlane.f32.xlu1 %v312_v61  ;;  %319 = vadd.xlane.f32.xlu0 %v311_v62  ;;  %v299_v1 = vmul.f32 %v512_v63, %v510_v60 }
 0x169   :  { %v330_v3 = vsel %vm329_vm0, %v316_v0, 0.0 }
 0x16a   :  { %v313_v2 = vmul.f32 %v369_v42, %v299_v1 }
 0x16c   :  { %323 = vadd.xlane.f32.xlu1 %v313_v2  ;;  %331 = vadd.xlane.f32.xlu0 %v330_v3 }
 0x170   :  { %327 = vadd.xlane.f32.xlu1 %v315_v4 }
 0x1ed   :  { %v318_v6 = vpop.xlane.xlu0 %317 }
 0x1ee   :  { %v340_v7 = vadd.f32 %v370_v5, %v318_v6 }
 0x1f0   :  { %348 = vst.msk [vmem:[%s660_s5] sm:$0xff] %vm347_vm1, %v340_v7 }
 0x1f1   :  { %v326_v8 = vpop.xlane.xlu0 %325 }
 0x1f2   :  { %v344_v9 = vadd.f32 %v370_v5, %v326_v8 }
 0x1f4   :  { %352 = vst.msk [vmem:[%s660_s5 + $0x20] sm:$0xff] %vm347_vm1, %v344_v9 }
 0x1f5   :  { %v322_v10 = vpop.xlane.xlu1 %321  ;;  %v320_v11 = vpop.xlane.xlu0 %319 }
 0x1f6   :  { %v342_v12 = vadd.f32 %v370_v5, %v322_v10  ;;  %v341_v13 = vadd.f32 %v370_v5, %v320_v11 }
 0x1f8   :  { %350 = vst.msk [vmem:[%s660_s5 + $0x10] sm:$0xff] %vm347_vm1, %v342_v12  ;;  %349 = vst.msk [vmem:[%s660_s5 + $0x8] sm:$0xff] %vm347_vm1, %v341_v13 }
 0x1f9   :  { %v324_v14 = vpop.xlane.xlu1 %323  ;;  %v332_v15 = vpop.xlane.xlu0 %331 }
 0x1fa   :  { %v343_v16 = vadd.f32 %v370_v5, %v324_v14  ;;  %v346_v17 = vadd.f32 %v370_v5, %v332_v15 }
 0x1fc   :  { %351 = vst.msk [vmem:[%s660_s5 + $0x18] sm:$0xff] %vm347_vm1, %v343_v16 }
 0x1fd   :  { %355 = vst.msk [vmem:[%s660_s5 + $0x30] sm:$0x3] %vm354_vm2, %v346_v17  ;;  %v328_v18 = vpop.xlane.xlu1 %327 }
 0x1fe   :  { %v345_v19 = vadd.f32 %v370_v5, %v328_v18 }
 0x200   :  { %353 = vst.msk [vmem:[%s660_s5 + $0x28] sm:$0xff] %vm347_vm1, %v345_v19 }
 0x201   :  { %360 = vsyncpa [#allocation4], 1 }
 0x202   :  { %361 = vsyncpa [#allocation6], 1 }

</bundles_post_ra>
